<compile_context>
chip_gen: v6e
topology: v6e:2x2x1
jax: 0.10.0
libtpu: 0.0.40
codegen_flags: <defaults>
</compile_context>

<pallas_src>
import math
from functools import partial

import jax
import jax.numpy as jnp
from jax.experimental import pallas as pl
from jax.experimental.pallas import tpu as pltpu

INV_SQRT2 = 1.0 / math.sqrt(2.0)


def _linear_proj_kernel(w_ref, b_ref, c_ref, x_ref, o_ref, *, bf16_matmul):
    # w_ref: (Cout, Cin)     weight, VMEM-resident (same block every step)
    # b_ref: (Cout, 1)       bias column (broadcast over L)
    # c_ref: (Cin, TILE_L)   conditioning tile (batch dim squeezed)
    # x_ref: (Cout, TILE_L)  residual tile
    # o_ref: (Cout, TILE_L)  output tile
    if bf16_matmul:
        # Single bf16 MXU pass, f32 accumulate: keeps the kernel HBM-bound.
        y = jnp.dot(w_ref[...].astype(jnp.bfloat16),
                    c_ref[...].astype(jnp.bfloat16),
                    preferred_element_type=jnp.float32)
    else:
        # Pinned true-f32 precision (multi-pass MXU) for exact f32 results.
        y = jnp.dot(w_ref[...], c_ref[...],
                    preferred_element_type=jnp.float32,
                    precision=jax.lax.Precision.HIGHEST)
    y = y + b_ref[...].astype(jnp.float32)
    y = (y + x_ref[...].astype(jnp.float32)) * INV_SQRT2
    o_ref[...] = y.astype(o_ref.dtype)


def _cdiv(a, b):
    return -(-a // b)


def _pick_tile_l(L, B, *, max_tile=8192, min_tile=512, target_steps=8):
    """Lane-dense L tile: large enough to amortize the ~0.35us per-grid-step
    cost, small enough that the (B, cdiv(L, tile)) grid keeps a few steps per
    TensorCore for pipelining / megacore sharding."""
    if L < 128:
        return L                                   # full-dim block (exempt from 128 rule)
    cap = min(max_tile, (L // 128) * 128)          # multiple of 128, <= L
    floor = min(min_tile, cap)
    # Prefer exact divisors of L (no wasted tail work); cap is always a candidate.
    cands = sorted({t for t in range(128, cap + 1, 128) if L % t == 0} | {cap},
                   reverse=True)

    def n_steps(t):
        return B * _cdiv(L, t)

    for t in cands:                                # largest tile with a deep-enough grid
        if t >= floor and n_steps(t) >= target_steps:
            return t
    # Short-grid shape: even the smallest decent tile can't reach target_steps;
    # take the smallest tile >= the DMA-efficiency floor (max pipeline depth).
    small = [t for t in cands if t >= floor]
    return min(small) if small else max(cands)


def _io_spec(block_shape, index_map, extra_buffering):
    """BlockSpec for a streamed operand; optionally request 3-deep buffering."""
    if extra_buffering and hasattr(pl, "Buffered"):
        try:
            return pl.BlockSpec(block_shape, index_map,
                                pipeline_mode=pl.Buffered(3))
        except TypeError:   # pipeline_mode kwarg unsupported in this jax version
            pass
    return pl.BlockSpec(block_shape, index_map)


def _build_call(B, Cin, Cout, L, tile_l, out_dtype, bf16_matmul, extra_buffering):
    grid = (B, _cdiv(L, tile_l))

    # Conservative (f32) VMEM estimate: streamed tiles * buffer depth + weight/bias.
    bufs = 3 if extra_buffering else 2
    vmem_est = bufs * (Cin + 2 * Cout) * tile_l * 4 + (Cout * Cin + Cout) * 4
    compiler_kwargs = dict(dimension_semantics=("parallel", "parallel"))
    if vmem_est > 12 * 1024 * 1024:
        # Big user-provided tiles can exceed the small scoped-VMEM default (v5e: 16 MiB).
        compiler_kwargs["vmem_limit_bytes"] = int(2 * vmem_est)

    return pl.pallas_call(
        partial(_linear_proj_kernel, bf16_matmul=bf16_matmul),
        out_shape=jax.ShapeDtypeStruct((B, Cout, L), out_dtype),
        grid_spec=pltpu.PrefetchScalarGridSpec(
            num_scalar_prefetch=0,
            grid=grid,
            in_specs=[
                # weight / bias: whole array, same block every step (VMEM-resident)
                pl.BlockSpec((Cout, Cin), lambda b, l: (0, 0)),
                pl.BlockSpec((Cout, 1), lambda b, l: (0, 0)),
                # c / x: one (channels, L-tile) slab per grid step; batch dim squeezed
                _io_spec((None, Cin, tile_l), lambda b, l: (b, 0, l), extra_buffering),
                _io_spec((None, Cout, tile_l), lambda b, l: (b, 0, l), extra_buffering),
            ],
            out_specs=pl.BlockSpec((None, Cout, tile_l), lambda b, l: (b, 0, l)),
        ),
        compiler_params=pltpu.CompilerParams(**compiler_kwargs),
    )


def linear_proj(x, c, weight, bias, *, tile_l=None, bf16_matmul=None):
    """x: (B, Cout, L), c: (B, Cin, L)  [NCL, like PyTorch Conv1d].
    Returns (Conv1d_k1(c; weight, bias) + x) / sqrt(2), dtype of x."""
    B, Cout, L = x.shape
    Cin = c.shape[1]
    assert c.shape == (B, Cin, L)
    assert weight.shape == (Cout, Cin)
    assert bias.shape == (Cout,)

    if tile_l is None:
        tile_l = _pick_tile_l(L, B)
    if bf16_matmul is None:
        # bf16 activations in HBM -> single-pass bf16 MXU; f32 inputs -> exact f32.
        bf16_matmul = (c.dtype == jnp.bfloat16) or (weight.dtype == jnp.bfloat16)

    n_steps = B * _cdiv(L, tile_l)
    extra_buffering = n_steps < 16          # short grid: hide DMA start latency

    b_col = bias.reshape(Cout, 1)
    args = (weight, b_col, c, x)

    try:
        return _build_call(B, Cin, Cout, L, tile_l, x.dtype,
                           bf16_matmul, extra_buffering)(*args)
    except Exception:
        if not extra_buffering:
            raise
        # Fall back to default double-buffering if Buffered(3) cannot lower.
        return _build_call(B, Cin, Cout, L, tile_l, x.dtype,
                           bf16_matmul, False)(*args)


def reference(x, c, weight, bias):
    # Conv1d(kernel=1): out[n,o,l] = sum_i W[o,i] * c[n,i,l] + b[o]
    y = jnp.einsum("oi,bil->bol",
                   weight.astype(jnp.float32), c.astype(jnp.float32),
                   precision=jax.lax.Precision.HIGHEST)
    y = y + bias.astype(jnp.float32)[None, :, None]
    return (y + x.astype(jnp.float32)) * INV_SQRT2


if __name__ == "__main__":
    key = jax.random.PRNGKey(0)
    k1, k2, k3, k4 = jax.random.split(key, 4)

    B = 2
    in_dim = 32      # Cin
    out_dim = 32     # out_dim defaults to in_dim in the module
    L = 1024         # sequence length (tiled along the lane axis)

    # Conv1d(in_dim, out_dim, 1): weight (out_dim, in_dim, 1) -> kernel dim
    # squeezed; bias (out_dim,). Deterministic uniform init.
    bound = 1.0 / math.sqrt(in_dim)
    weight = jax.random.uniform(k1, (out_dim, in_dim), jnp.float32, -bound, bound)
    bias = jax.random.uniform(k2, (out_dim,), jnp.float32, -bound, bound)

    x = jax.random.normal(k3, (B, out_dim, L), jnp.float32)  # NCL
    c = jax.random.normal(k4, (B, in_dim, L), jnp.float32)   # NCL

    # 1) f32 activations, pinned HIGHEST-precision matmul.
    out = jax.block_until_ready(linear_proj(x, c, weight, bias))
    ref = reference(x, c, weight, bias)
    assert out.shape == (B, out_dim, L) and out.dtype == x.dtype
    assert jnp.allclose(out, ref, atol=1e-5, rtol=1e-5), "f32 mismatch vs reference"

    # 2) bf16 activations / residual / output in HBM (v5e/v6e bandwidth win):
    #    single bf16 MXU pass, f32 accumulate, bf16 store.
    x_bf = x.astype(jnp.bfloat16)
    c_bf = c.astype(jnp.bfloat16)
    out_bf = jax.block_until_ready(linear_proj(x_bf, c_bf, weight, bias))
    ref_bf = reference(x_bf, c_bf, weight, bias)
    assert out_bf.dtype == jnp.bfloat16
    assert jnp.allclose(out_bf.astype(jnp.float32), ref_bf,
                        atol=5e-2, rtol=5e-2), "bf16 mismatch vs reference"

    # 3) Awkward length (L not a multiple of the tile): cdiv grid + masked tail.
    L2 = 1000
    x2 = jax.random.normal(k3, (B, out_dim, L2), jnp.float32)
    c2 = jax.random.normal(k4, (B, in_dim, L2), jnp.float32)
    out2 = jax.block_until_ready(linear_proj(x2, c2, weight, bias))
    ref2 = reference(x2, c2, weight, bias)
    assert out2.shape == (B, out_dim, L2)
    assert jnp.allclose(out2, ref2, atol=1e-5, rtol=1e-5), "ragged-L mismatch vs reference"

    print("KERNEL_OK")
</pallas_src>

<mosaic_0001>
module attributes {stable_mosaic.version = 11 : i64} {
  func.func @_linear_proj_kernel(%arg0: i32, %arg1: i32, %arg2: memref<32x32xf32, #tpu.memory_space<vmem>>, %arg3: memref<32x1xf32, #tpu.memory_space<vmem>>, %arg4: memref<1x32x512xf32, #tpu.memory_space<vmem>>, %arg5: memref<1x32x512xf32, #tpu.memory_space<vmem>>, %arg6: memref<1x32x512xf32, #tpu.memory_space<vmem>>) attributes {dimension_semantics = [#tpu.dimension_semantics<parallel>, #tpu.dimension_semantics<parallel>], iteration_bounds = array<i64: 2, 2>, scalar_prefetch = 0 : i64, scratch_operands = 0 : i64, tpu.core_type = #tpu.core_type<tc>, window_params = [{pipeline_mode = #tpu.pipeline_mode<synchronous>, transform_indices = @transform_0, window_bounds = array<i64: 32, 32>}, {pipeline_mode = #tpu.pipeline_mode<synchronous>, transform_indices = @transform_1, window_bounds = array<i64: 32, 1>}, {transform_indices = @transform_2, window_bounds = array<i64: 1, 32, 512>}, {transform_indices = @transform_3, window_bounds = array<i64: 1, 32, 512>}, {transform_indices = @transform_4, window_bounds = array<i64: 1, 32, 512>}]} {
    %c0 = arith.constant 0 : index
    %c0_0 = arith.constant 0 : index
    %0 = vector.load %arg2[%c0, %c0_0] : memref<32x32xf32, #tpu.memory_space<vmem>>, vector<32x32xf32>
    %c0_1 = arith.constant 0 : index
    %c0_2 = arith.constant 0 : index
    %c0_3 = arith.constant 0 : index
    %1 = vector.load %arg4[%c0_1, %c0_2, %c0_3] : memref<1x32x512xf32, #tpu.memory_space<vmem>>, vector<1x32x512xf32>
    %2 = vector.shape_cast %1 : vector<1x32x512xf32> to vector<32x512xf32>
    %cst = arith.constant dense<0.000000e+00> : vector<32x512xf32>
    %3 = tpu.matmul %0, %2, %cst {dimension_numbers = #tpu.dot_dimension_numbers<[1], [0], [0], [1], [0, 0, 1, 1], [], []>, precision = #tpu.contract_precision<fp32>} : vector<32x32xf32>, vector<32x512xf32>, vector<32x512xf32> -> vector<32x512xf32>
    %c0_4 = arith.constant 0 : index
    %c0_5 = arith.constant 0 : index
    %4 = vector.load %arg3[%c0_4, %c0_5] : memref<32x1xf32, #tpu.memory_space<vmem>>, vector<32x1xf32>
    %5 = vector.broadcast %4 : vector<32x1xf32> to vector<32x512xf32>
    %6 = arith.addf %3, %5 : vector<32x512xf32>
    %c0_6 = arith.constant 0 : index
    %c0_7 = arith.constant 0 : index
    %c0_8 = arith.constant 0 : index
    %7 = vector.load %arg5[%c0_6, %c0_7, %c0_8] : memref<1x32x512xf32, #tpu.memory_space<vmem>>, vector<1x32x512xf32>
    %8 = vector.shape_cast %7 : vector<1x32x512xf32> to vector<32x512xf32>
    %9 = arith.addf %6, %8 : vector<32x512xf32>
    %cst_9 = arith.constant 0.707106769 : f32
    %10 = vector.broadcast %cst_9 : f32 to vector<32x512xf32>
    %11 = arith.mulf %9, %10 : vector<32x512xf32>
    %c0_10 = arith.constant 0 : index
    %c0_11 = arith.constant 0 : index
    %c0_12 = arith.constant 0 : index
    %12 = vector.load %arg6[%c0_10, %c0_11, %c0_12] : memref<1x32x512xf32, #tpu.memory_space<vmem>>, vector<1x32x512xf32>
    %13 = vector.shape_cast %12 : vector<1x32x512xf32> to vector<32x512xf32>
    %14 = vector.shape_cast %11 : vector<32x512xf32> to vector<1x32x512xf32>
    tpu.vector_store %arg6[%c0_10, %c0_11, %c0_12], %14 {strides = array<i32>} : memref<1x32x512xf32, #tpu.memory_space<vmem>>, vector<1x32x512xf32>,
    return
  }
  func.func @transform_0(%arg0: i32, %arg1: i32) -> (i32, i32) {
    %c0_i32 = arith.constant 0 : i32
    %c0_i32_0 = arith.constant 0 : i32
    %c0_i32_1 = arith.constant 0 : i32
    return %c0_i32, %c0_i32_0 : i32, i32
  }
  func.func @transform_1(%arg0: i32, %arg1: i32) -> (i32, i32) {
    %c0_i32 = arith.constant 0 : i32
    %c0_i32_0 = arith.constant 0 : i32
    %c0_i32_1 = arith.constant 0 : i32
    return %c0_i32, %c0_i32_0 : i32, i32
  }
  func.func @transform_2(%arg0: i32, %arg1: i32) -> (i32, i32, i32) {
    %c0_i32 = arith.constant 0 : i32
    %c0_i32_0 = arith.constant 0 : i32
    return %arg0, %c0_i32, %arg1 : i32, i32, i32
  }
  func.func @transform_3(%arg0: i32, %arg1: i32) -> (i32, i32, i32) {
    %c0_i32 = arith.constant 0 : i32
    %c0_i32_0 = arith.constant 0 : i32
    return %arg0, %c0_i32, %arg1 : i32, i32, i32
  }
  func.func @transform_4(%arg0: i32, %arg1: i32) -> (i32, i32, i32) {
    %c0_i32 = arith.constant 0 : i32
    %c0_i32_0 = arith.constant 0 : i32
    return %arg0, %c0_i32, %arg1 : i32, i32, i32
  }
}

</mosaic_0001>

<bundles_post_ra>
// kernel: tpu_custom_call.1
= control target key start
LH: loop header
LB: loop body
LE: loop exit
PB: predicated region body
PF: predicated region fallthrough
CT: control target
= control target key end

     0   :  { %s2933_s0 = inlined_call_operand.vmem [shape: f32[32,32], index: 0, kind: input, shape index: {}]   ;;  %s2934_s1 = inlined_call_operand.vmem [shape: f32[32,1], index: 1, kind: input, shape index: {}]   ;;  %s2935_s2 = inlined_call_operand.hbm [shape: f32[2,32,1024], index: 2, kind: input, shape index: {}]   ;;  %s2936_s3 = inlined_call_operand.hbm [shape: f32[2,32,1024], index: 3, kind: input, shape index: {}]   ;;  %s2937_s4 = inlined_call_operand.hbm [shape: f32[2,32,1024], index: 4, kind: output, shape index: {}]  }
   0x1   :  { %2943 = sst [smem:[#allocation16_spill]] %s2935_s2 }
   0x2   :  { %9 = vsyncpa [#allocation3], 0 }
   0x3   :  { %11 = vsyncpa [#allocation3 + $0x1], 0 }
   0x4   :  { %12 = vsyncpa [#allocation6], 0 }
   0x5   :  { %14 = vsyncpa [#allocation6 + $0x1], 0 }
   0x6   :  { %15 = vsyncpa [#allocation4], 0 }
   0x7   :  { %17 = vsyncpa [#allocation4 + $0x1], 0  ;;  %s2223_s15 = smov 0   ;;  %s2225_s16 = smov 0  }
   0x8   :  { %s2227_s17 = smov 0   ;;  %s2229_s18 = smov 0  }
   0x9   :  { %s2231_s19 = smov 0   ;;  %s2233_s20 = smov 0  }
   0xa   :  { %s2235_s21 = smov 0   ;;  %s2237_s22 = smov 0  }
   0xb LB: > { %2944 = sst [smem:[#allocation11_spill]] %s2177_s20  ;;  %s1914_s23 = sadd.s32 4294967295, %s2185_s22   ;;  %s2185_s22 = sphi %s2237_s22, %s23_s22   ;;  %s2181_s21 = sphi %s2235_s21, %s2961_s21   ;;  %s2177_s20 = sphi %s2233_s20, %s2960_s20   ;;  %s2173_s19 = sphi %s2231_s19, %s2959_s19   ;;  %s2169_s18 = sphi %s2229_s18, %s2958_s18   ;;  %s2165_s17 = sphi %s2227_s17, %s2964_s17   ;;  %s2161_s16 = sphi %s2225_s16, %s2963_s16   ;;  %s2157_s15 = sphi %s2223_s15, %s2962_s15  }
   0xc   : > { %2945 = sst [smem:[#allocation12_spill]] %s2181_s21  ;;  %s1915_s24 = sadd.s32 4294967294, %s2185_s22  }
   0xd   : > { %s32_s25 = sadd.s32 1, %s2177_s20  ;;  %s35_s26 = sadd.s32 1, %s2181_s21 }
   0xe   : > { %p33_p0 = scmp.ge.s32.totalorder %s32_s25, 2  ;;  %s86_s27 = sadd.s32 1, %s2165_s17 }
   0xf   : > { %p93_p1 = scmp.ne.s32.totalorder %s2165_s17, %s2161_s16  ;;  %p94_p2 = scmp.eq.s32.totalorder %s2185_s22, 0 }
  0x10   : > { %s2966_s25 = smov (%p33_p0, %s32_s25), 0  ;;  %s2968_s26 = smov (!%p33_p0, %s35_s26), %s2181_s21 }
  0x11   : > { %2946 = sst [smem:[#allocation13_spill]] %s2966_s25  ;;  %s82_s28 = ssub.s32 %s2177_s20, %s2966_s25 }
  0x12   : > { %p2276_p3 = por %p94_p2, %p93_p1  ;;  %p37_p4 = scmp.ge.s32.totalorder %s2968_s26, 2 }
  0x13   : > { %p99_p5 = scmp.ne.s32.totalorder %s2161_s16, %s2157_s15  ;;  %p100_p6 = scmp.eq.s32.totalorder %s1914_s23, 0 }
  0x14   : > { %p153_p7 = scmp.eq.s32.totalorder %s1914_s23, 3  ;;  %s2970_s26 = smov (%p37_p4, %s2968_s26), 0 }
  0x15   : > { %2948 = sst [smem:[#allocation14_spill]] %s2970_s26  ;;  %p2284_p8 = por %p100_p6, %p99_p5 }
  0x16   : > { %p2288_p9 = por %p153_p7, %p93_p1  ;;  %s81_s6 = ssub.s32 %s2181_s21, %s2970_s26 }
  0x17   : > { %p159_p10 = scmp.eq.s32.totalorder %s1915_s24, 3  ;;  %s83_s7 = sor.u32 %s82_s28, %s81_s6 }
  0x18   : > { %p84_p11 = scmp.eq.s32.totalorder %s83_s7, 0  ;;  %p1953_p13 = scmp.lt.s32.totalorder %s2185_s22, 4 }
  0x19   : > { %p2294_p12 = por %p159_p10, %p99_p5  ;;  %s2300_s9 = sand.u32 1, %s2165_s17  }
  0x1a   : > { %s2303_s10 = scalar_select %p84_p11, %s2165_s17, %s86_s27  }
  0x1b   : > { %s2940_s11 = sshll.u32 %s2300_s9, 7  ;;  %s1919_s12 = sshll.u32 %s2177_s20, 2 }
  0x1c   : > { %2952 = sst [smem:[#allocation15_spill]] %s2303_s10  ;;  %s1920_s13 = sshll.u32 %s2181_s21, 5 }
  0x1d   : > { %s189_s14 = scalar_lea.vmem [#allocation2], %s2940_s11  ;;  %s2310_s24 = sadd.s32 %s1920_s13, %s1919_s12 }
  0x1e   : > { %s198_s23 = sshll.u32 %s189_s14, 4  ;;  %s1921_s28 = sshll.u32 %s2310_s24, 7  ;;  %s199_s23 = int_to_ptr.vmem [resolvable:$true] %s198_s23 }
  0x1f   : > { %p2315_p0 = pnand %p1953_p13, %p2276_p3  ;;  %s2954_s2 = sld [smem:[#allocation16_spill]] }
  0x20   : > { %p1926_p1 = scmp.ge.s32.totalorder %s2185_s22, 1  ;;  %s186_s25 = scalar_lea.sflag [#allocation3], %s2300_s9 }
  0x21   : > { %p2031_p2 = pneg %p2315_p0  ;;  %s2042_s12 = scalar_lea.vmem %s199_s23, 2048 }
  0x22   : > { %p2043_p4 = scmp.ne.s32.totalorder %s199_s23, %s2042_s12  ;;  %s2187_s29 = smov [#allocation2]  }
  0x23   : > { %s2047_s13 = sshll.u32 %s2187_s29, 4  ;;  %s2048_s13 = int_to_ptr.vmem [resolvable:$false] %s2047_s13 }
  0x24   : > { %p2045_p5 = pnand %p2043_p4, %p2031_p2  ;;  %s2049_s14 = scalar_lea.vmem %s2048_s13, 4096 }
  0x25   : > { %s197_s27 = scalar_lea.hbm %s2954_s2, %s1921_s28  ;;  %p2050_p3 = scmp.lt.s32.totalorder %s199_s23, %s2048_s13 }
  0x26   : > { %p2046_p6 = pneg %p2045_p5  ;;  %p2051_p7 = scmp.lt.s32.totalorder %s2049_s14, %s2042_s12 }
  0x28   : > { %p2052_p10 = por %p2051_p7, %p2050_p3 }
  0x2a   : > { %p2053_p11 = pnand %p2052_p10, %p2046_p6 }
  0x2c   : > { %2056 = shalt.err (!%p2053_p11)
}
  0x2d   : > { %s2188_s26 = smov 1024   ;;  %s2189_s24 = smov 512  }
  0x2e   : > { %s2190_s7 = smov 32   ;;  %p229_p13 = scmp.lt.s32.totalorder %s2185_s22, 5 }
  0x2f   : > { %1945 = dma.hbm_to_vmem [thread:$0]  (!%p2315_p0), %s197_s27, 2048, %s199_s23, %s186_s25, %s2188_s26, %s2189_s24, %s2190_s7  }
  0x30   : > { %s220_s13 = scalar_lea.hbm %s2936_s3, %s1921_s28  ;;  %p2337_p4 = pnand %p1926_p1, %p229_p13 }
  0x31   : > { %s2956_s14 = sshll.u32 %s2300_s9, 7  ;;  %s209_s20 = scalar_lea.sflag [#allocation6], %s2300_s9 }
  0x32   : > { %s212_s2 = scalar_lea.vmem [#allocation5], %s2956_s14  ;;  %s2191_s25 = smov [#allocation5]  }
  0x33   : > { %s221_s21 = sshll.u32 %s212_s2, 4  ;;  %s2075_s23 = sshll.u32 %s2191_s25, 4  ;;  %s222_s21 = int_to_ptr.vmem [resolvable:$true] %s221_s21  ;;  %s2076_s23 = int_to_ptr.vmem [resolvable:$false] %s2075_s23 }
  0x34   : > { %s2070_s10 = scalar_lea.vmem %s222_s21, 2048  ;;  %s2077_s11 = scalar_lea.vmem %s2076_s23, 4096 }
  0x35   : > { %p2071_p5 = scmp.ne.s32.totalorder %s222_s21, %s2070_s10  ;;  %p2078_p7 = scmp.lt.s32.totalorder %s222_s21, %s2076_s23 }
  0x36   : > { %p2079_p1 = scmp.lt.s32.totalorder %s2077_s11, %s2070_s10 }
  0x37   : > { %p2073_p6 = pnand %p2071_p5, %p2031_p2 }
  0x38   : > { %p2080_p10 = por %p2079_p1, %p2078_p7 }
  0x39   : > { %p2074_p3 = pneg %p2073_p6 }
  0x3b   : > { %p2081_p11 = pnand %p2080_p10, %p2074_p3 }
  0x3d   : > { %2084 = shalt.err (!%p2081_p11)
}
  0x3e   : > { %1948 = dma.hbm_to_vmem [thread:$0]  (!%p2315_p0), %s220_s13, 2048, %s222_s21, %s209_s20, %s2188_s26, %s2189_s24, %s2190_s7  }
  0x3f   : > { %233 = sbr.rel (%p2337_p4) target bundleno = 401 (0x191), region = 36  ;;  %s2352_s2 = sand.u32 (!%p2337_p4), 1, %s2161_s16  }
  0x40   : > { %s2355_s9 = sshll.u32 (!%p2337_p4), %s2352_s2, 7  ;;  %s236_s28 = scalar_lea.sflag (!%p2337_p4), [#allocation3], %s2352_s2 }
  0x41   : > { %s2359_s10 = scalar_lea.vmem (!%p2337_p4), [#allocation2], %s2355_s9 }
  0x44   : > { %2144 = dma.done.wait (%p2284_p8), %s236_s28, 2048  }
  0x45   : > { %2146 = vsyncadd (%p2284_p8), %s236_s28, 4294965248  ;;  %s245_s20 = scalar_lea.sflag [#allocation6], %s2352_s2  ;;  %s2367_s21 = scalar_lea.vmem [#allocation5], %s2355_s9 }
  0x46   : > { %2148 = dma.done.wait (%p2284_p8), %s245_s20, 2048  }
  0x47   : > { %2150 = vsyncadd (%p2284_p8), %s245_s20, 4294965248  ;;  %v2192_v0 = vmov 0.0   ;;  %v2193_v1 = vmov 0   ;;  %v298_v2 = vld [vmem:[%s2359_s10 + $0x68] sm:$0xff]  ;;  %v297_v3 = vld [vmem:[%s2359_s10 + $0x60] sm:$0xff]  ;;  %vm325_vm0 = vcmask 261120  }
  0x48   : > { %410 = vmatprep.mubr.f32.mxu0 %v2192_v0  ;;  %559 = vmatprep.mubr.f32.mxu1 %v2192_v0  ;;  %v294_v4 = vld [vmem:[%s2359_s10 + $0x48] sm:$0xff]  ;;  %v2378_v5 = vand.u32 4294901760, %v298_v2  ;;  %v2380_v6 = vand.u32 4294901760, %v297_v3  ;;  %v293_v8 = vld [vmem:[%s2359_s10 + $0x40] sm:$0xff]  ;;  %v303_v39 = vld [vmem:[%s2934_s1 + $0x10] sm:$0xff]  ;;  %s1932_s6 = sshll.u32 %s2173_s19, 5 }
  0x49   : > { %2027 = vset.pattern.permute.xlu0 %v2193_v1  ;;  %2028 = vset.pattern.permute.xlu1 %v2193_v1  ;;  %v2382_v7 = vand.u32 4294901760, %v294_v4  ;;  %v290_v9 = vld [vmem:[%s2359_s10 + $0x28] sm:$0xff]  ;;  %v289_v10 = vld [vmem:[%s2359_s10 + $0x20] sm:$0xff]  ;;  %v2387_v11 = vand.u32 4294901760, %v293_v8  ;;  %v283_v48 = vld [vmem:[%s2933_s0 + $0x10] sm:$0xff]  ;;  %s2194_s13 = smov [#allocation7]  }
  0x4a   : > { %v2389_v12 = vand.u32 4294901760, %v290_v9  ;;  %v2391_v13 = vand.u32 4294901760, %v289_v10  ;;  %v286_v14 = vld [vmem:[%s2359_s10 + $0x8] sm:$0xff]  ;;  %v285_v15 = vld [vmem:[%s2359_s10] sm:$0xff]  ;;  %363 = vmatprep.subr.mxu0 %v2378_v5  ;;  %v2404_v19 = vsub.f32 %v298_v2, %v2378_v5  ;;  %v2414_v23 = vsub.f32 %v297_v3, %v2380_v6  ;;  %317 = vperm.xlu1 %2028, %v303_v39   ;;  %v284_v49 = vld [vmem:[%s2933_s0 + $0x18] sm:$0xff]  ;;  %s2089_s12 = sshll.u32 %s2194_s13, 4  ;;  %s2090_s12 = int_to_ptr.vmem [resolvable:$false] %s2089_s12 }
  0x4b   : > { %v281_v16 = vld [vmem:[%s2933_s0] sm:$0xff]  ;;  %v2399_v17 = vand.u32 4294901760, %v286_v14  ;;  %v2401_v18 = vand.u32 4294901760, %v285_v15  ;;  %v282_v21 = vld [vmem:[%s2933_s0 + $0x8] sm:$0xff]  ;;  %365 = vmatpush1.msra.mxu0 %v2380_v6  ;;  %v2417_v24 = vsub.f32 %v294_v4, %v2382_v7  ;;  %v2420_v25 = vsub.f32 %v293_v8, %v2387_v11  ;;  %v304_v55 = vld [vmem:[%s2934_s1 + $0x18] sm:$0xff]  ;;  %s2091_s14 = scalar_lea.vmem %s2090_s12, 4096 }
  0x4c   : > { %v327_v20 = vsel %vm325_vm0, %v281_v16, 0  ;;  %367 = vmatprep.subr.mxu0 %v2382_v7  ;;  %v481_v26 = vand.u32 4294901760, %v2404_v19  ;;  %v2425_v27 = vsub.f32 %v290_v9, %v2389_v12  ;;  %v330_v28 = vsel %vm325_vm0, %v282_v21, 0  ;;  %v301_v34 = vld [vmem:[%s2934_s1] sm:$0xff]  ;;  %v302_v50 = vld [vmem:[%s2934_s1 + $0x8] sm:$0xff] }
  0x4d   : > { %v2411_v22 = vand.u32 4294901760, %v327_v20  ;;  %v2429_v29 = vsub.f32 %v289_v10, %v2391_v13  ;;  %369 = vmatpush1.msra.mxu0 %v2387_v11  ;;  %v487_v31 = vand.u32 4294901760, %v2414_v23  ;;  %v493_v32 = vand.u32 4294901760, %v2417_v24  ;;  %307 = vperm.xlu0 %2027, %v301_v34  }
  0x4e   : > { %v499_v33 = vand.u32 4294901760, %v2420_v25  ;;  %371 = vmatprep.subr.mxu0 %v2389_v12  ;;  %v482_v35 = vsub.f32 %v2404_v19, %v481_v26  ;;  %v505_v36 = vand.u32 4294901760, %v2425_v27  ;;  %v2446_v37 = vand.u32 4294901760, %v330_v28  ;;  %322 = vperm.xlu1 %2028, %v304_v55  }
  0x4f   : > { %v2433_v30 = vsub.f32 %v327_v20, %v2411_v22  ;;  %v511_v38 = vand.u32 4294901760, %v2429_v29  ;;  %373 = vmatpush1.msra.mxu0 %v2391_v13  ;;  %v488_v41 = vsub.f32 %v2414_v23, %v487_v31  ;;  %v494_v42 = vsub.f32 %v2417_v24, %v493_v32 }
  0x50   : > { %v500_v43 = vsub.f32 %v2420_v25, %v499_v33  ;;  %375 = vmatprep.subr.mxu0 %v2399_v17  ;;  %v483_v44 = vand.u32 4294901760, %v482_v35  ;;  %v506_v45 = vsub.f32 %v2425_v27, %v505_v36  ;;  %v2470_v46 = vsub.f32 %v330_v28, %v2446_v37 }
  0x51   : > { %v2454_v40 = vand.u32 4294901760, %v2433_v30  ;;  %v512_v47 = vsub.f32 %v2429_v29, %v511_v38  ;;  %377 = vmatpush1.msra.mxu0 %v2401_v18  ;;  %v489_v52 = vand.u32 4294901760, %v488_v41  ;;  %v495_v53 = vand.u32 4294901760, %v494_v42  ;;  %312 = vperm.xlu0 %2027, %v302_v50  }
  0x52   : > { %v501_v54 = vand.u32 4294901760, %v500_v43  ;;  %484 = vmatprep.subr.mxu1 %v483_v44  ;;  %v507_v56 = vand.u32 4294901760, %v506_v45  ;;  %v2491_v57 = vand.u32 4294901760, %v2470_v46  ;;  %v2494_v59 = vsub.f32 %v286_v14, %v2399_v17  ;;  %614 = vmatprep.subr.mxu0 %v2404_v19  ;;  %v300_v43 = vld [vmem:[%s2359_s10 + $0x78] sm:$0xff]  ;;  %v299_v45 = vld [vmem:[%s2359_s10 + $0x70] sm:$0xff] }
  0x53   : > { %v414_v51 = vsub.f32 %v2433_v30, %v2454_v40  ;;  %v513_v58 = vand.u32 4294901760, %v512_v47  ;;  %490 = vmatpush1.msra.mxu1 %v489_v52  ;;  %v2500_v61 = vsub.f32 %v285_v15, %v2401_v18  ;;  %v333_v62 = vsel %vm325_vm0, %v283_v48, 0  ;;  %v296_v47 = vld [vmem:[%s2359_s10 + $0x58] sm:$0xff]  ;;  %v295_v19 = vld [vmem:[%s2359_s10 + $0x50] sm:$0xff] }
  0x54   : > { %v336_v63 = vsel %vm325_vm0, %v284_v49, 0  ;;  %496 = vmatprep.subr.mxu1 %v495_v53  ;;  %v425_v1 = vsub.f32 %v2470_v46, %v2491_v57  ;;  %v517_v2 = vand.u32 4294901760, %v2494_v59  ;;  %v2507_v3 = vand.u32 4294901760, %v333_v62 }
  0x55   : > { %v2497_v60 = vand.u32 4294901760, %v414_v51  ;;  %v2509_v4 = vand.u32 4294901760, %v336_v63  ;;  %502 = vmatpush1.msra.mxu1 %v501_v54  ;;  %v523_v8 = vand.u32 4294901760, %v2500_v61  ;;  %v2570_v44 = vand.u32 4294901760, %v300_v43 }
  0x56   : > { %508 = vmatprep.subr.mxu1 %v507_v56  ;;  %v2514_v9 = vand.u32 4294901760, %v425_v1  ;;  %v518_v10 = vsub.f32 %v2494_v59, %v517_v2  ;;  %v2520_v14 = vsub.f32 %v333_v62, %v2507_v3  ;;  %v2582_v48 = vand.u32 4294901760, %v299_v45 }
  0x57   : > { %416 = vmatmul.mubr.f32.vlgmr.msra.gmra.mxu0 %v2497_v60  ;;  %v2523_v15 = vsub.f32 %v336_v63, %v2509_v4  ;;  %514 = vmatpush1.msra.mxu1 %v513_v58  ;;  %v524_v16 = vsub.f32 %v2500_v61, %v523_v8  ;;  %v2587_v49 = vsub.f32 %v300_v43, %v2570_v44  ;;  %v2589_v50 = vand.u32 4294901760, %v296_v47 }
  0x58   : > { %421 = vmatprep.mubr.f32.mxu0 %v2192_v0  ;;  %617 = vmatpush1.msra.mxu0 %v2414_v23  ;;  %v519_v20 = vand.u32 4294901760, %v518_v10  ;;  %v2530_v21 = vand.u32 4294901760, %v2520_v14  ;;  %v2603_v23 = vand.u32 4294901760, %v295_v19 }
  0x59   : > { %620 = vmatprep.subr.mxu0 %v2417_v24  ;;  %v2534_v28 = vand.u32 4294901760, %v2523_v15  ;;  %v525_v34 = vand.u32 4294901760, %v524_v16  ;;  %v1171_v24 = vand.u32 4294901760, %v2587_v49 }
  0x5a   : > { %520 = vmatprep.subr.mxu1 %v519_v20  ;;  %v436_v35 = vsub.f32 %v2520_v14, %v2530_v21  ;;  %623 = vmatpush1.msra.mxu0 %v2420_v25  ;;  %v2610_v25 = vsub.f32 %v296_v47, %v2589_v50  ;;  %v2627_v51 = vsub.f32 %v295_v19, %v2603_v23 }
  0x5b   : > { %427 = vmatmul.mubr.f32.gmra.mxu0 %v2514_v9  ;;  %v447_v39 = vsub.f32 %v2523_v15, %v2534_v28  ;;  %526 = vmatpush1.msra.mxu1 %v525_v34 }
  0x5c   : > { %432 = vmatprep.mubr.f32.mxu0 %v2192_v0  ;;  %561 = vmatmul.mubr.f32.vlgmr.msra.gmra.mxu1 %v2411_v22  ;;  %v2545_v41 = vand.u32 4294901760, %v436_v35  ;;  %v1189_v54 = vand.u32 4294901760, %v2627_v51 }
  0x5d   : > { %726 = vmatprep.subr.mxu1 %v2378_v5  ;;  %566 = vmatprep.mubr.f32.mxu1 %v2192_v0  ;;  %v2551_v42 = vand.u32 4294901760, %v447_v39 }
  0x5e   : > { %728 = vmatpush1.msra.mxu1 %v2380_v6  ;;  %626 = vmatprep.subr.mxu0 %v2425_v27 }
  0x5f   : > { %438 = vmatmul.mubr.f32.gmra.mxu0 %v2545_v41  ;;  %730 = vmatprep.subr.mxu1 %v2382_v7 }
  0x60   : > { %443 = vmatprep.mubr.f32.mxu0 %v2192_v0  ;;  %568 = vmatmul.mubr.f32.gmra.mxu1 %v2446_v37 }
  0x61   : > { %629 = vmatpush1.msra.mxu0 %v2429_v29  ;;  %732 = vmatpush1.msra.mxu1 %v2387_v11  ;;  %v1172_v29 = vsub.f32 %v2587_v49, %v1171_v24 }
  0x62   : > { %573 = vmatprep.mubr.f32.mxu1 %v2192_v0  ;;  %632 = vmatprep.subr.mxu0 %v2494_v59 }
  0x63   : > { %449 = vmatmul.mubr.f32.gmra.mxu0 %v2551_v42  ;;  %734 = vmatprep.subr.mxu1 %v2389_v12 }
  0x64   : > { %635 = vmatpush1.msra.mxu0 %v2500_v61  ;;  %668 = vmatprep.mubr.f32.mxu0 %v2192_v0  ;;  %v1190_v61 = vsub.f32 %v2627_v51, %v1189_v54 }
  0x65   : > { %575 = vmatmul.mubr.f32.gmra.mxu1 %v2507_v3  ;;  %837 = vmatprep.subr.mxu0 %v481_v26  ;;  %v292_v26 = vld [vmem:[%s2359_s10 + $0x38] sm:$0xff] }
  0x66   : > { %736 = vmatpush1.msra.mxu1 %v2391_v13  ;;  %580 = vmatprep.mubr.f32.mxu1 %v2192_v0 }
  0x67   : > { %671 = vmatmul.mubr.f32.vlgmr.msra.gmra.mxu0 %v2433_v30  ;;  %738 = vmatprep.subr.mxu1 %v2399_v17 }
  0x68   : > { %676 = vmatprep.mubr.f32.mxu0 %v2192_v0  ;;  %740 = vmatpush1.msra.mxu1 %v2401_v18 }
  0x69   : > { %582 = vmatmul.mubr.f32.gmra.mxu1 %v2509_v4  ;;  %841 = vmatpush1.msra.mxu0 %v487_v31  ;;  %v291_v31 = vld [vmem:[%s2359_s10 + $0x30] sm:$0xff] }
  0x6a   : > { %773 = vmatprep.mubr.f32.mxu1 %v2192_v0  ;;  %952 = vmatprep.subr.mxu1 %v2378_v5  ;;  %v2601_v5 = vsub.f32 %v299_v45, %v2582_v48  ;;  %v2629_v27 = vand.u32 4294901760, %v291_v31 }
  0x6b   : > { %679 = vmatmul.mubr.f32.gmra.mxu0 %v2470_v46  ;;  %845 = vmatprep.subr.mxu0 %v493_v32  ;;  %v2620_v32 = vand.u32 4294901760, %v292_v26 }
  0x6c   : > { %684 = vmatprep.mubr.f32.mxu0 %v2192_v0  ;;  %849 = vmatpush1.msra.mxu0 %v499_v33  ;;  %v1177_v33 = vand.u32 4294901760, %v2601_v5  ;;  %v2657_v55 = vsub.f32 %v291_v31, %v2629_v27 }
  0x6d   : > { %777 = vmatmul.mubr.f32.vlgmr.msra.gmra.mxu1 %v2454_v40  ;;  %853 = vmatprep.subr.mxu0 %v505_v36  ;;  %v2648_v52 = vsub.f32 %v292_v26, %v2620_v32 }
  0x6e   : > { %954 = vmatpush1.msra.mxu1 %v2380_v6  ;;  %782 = vmatprep.mubr.f32.mxu1 %v2192_v0  ;;  %v288_v6 = vld [vmem:[%s2359_s10 + $0x18] sm:$0xff]  ;;  %v1178_v53 = vsub.f32 %v2601_v5, %v1177_v33 }
  0x6f   : > { %687 = vmatmul.mubr.f32.gmra.mxu0 %v2520_v14  ;;  %956 = vmatprep.subr.mxu1 %v2382_v7  ;;  %v287_v7 = vld [vmem:[%s2359_s10 + $0x10] sm:$0xff]  ;;  %v2638_v36 = vand.u32 4294901760, %v288_v6  ;;  %s2830_s10 = scalar_lea.vmem [#allocation7], %s2355_s9  ;;  %s1931_s9 = sshll.u32 %s2169_s18, 2 }
  0x70   : > { %692 = vmatprep.mubr.f32.mxu0 %v2192_v0  ;;  %857 = vmatpush1.msra.mxu0 %v511_v38  ;;  %v2643_v38 = vand.u32 4294901760, %v287_v7  ;;  %v1179_v59 = vand.u32 4294901760, %v1178_v53  ;;  %s1795_s18 = sadd.s32 %s1932_s6, %s1931_s9  ;;  %s1798_s27 = sshll.u32 %s2830_s10, 4  ;;  %s2878_s27 = int_to_ptr.vmem [resolvable:$true] %s1798_s27 }
  0x71   : > { %786 = vmatmul.mubr.f32.gmra.mxu1 %v2491_v57  ;;  %861 = vmatprep.subr.mxu0 %v517_v2  ;;  %v2665_v56 = vsub.f32 %v288_v6, %v2638_v36  ;;  %s1933_s19 = sshll.u32 %s1795_s18, 7  ;;  %s2085_s29 = scalar_lea.vmem %s2878_s27, 2048 }
  0x72   : > { %958 = vmatpush1.msra.mxu1 %v2387_v11  ;;  %791 = vmatprep.mubr.f32.mxu1 %v2192_v0  ;;  %v1183_v11 = vand.u32 4294901760, %v2610_v25  ;;  %v2670_v58 = vsub.f32 %v287_v7, %v2643_v38  ;;  %s2876_s7 = scalar_lea.hbm %s2937_s4, %s1933_s19  ;;  %p2086_p8 = scmp.ne.s32.totalorder %s2878_s27, %s2085_s29 }
  0x73   : > { %695 = vmatmul.mubr.f32.gmra.mxu0 %v2523_v15  ;;  %960 = vmatprep.subr.mxu1 %v2389_v12  ;;  %v1173_v12 = vand.u32 4294901760, %v1172_v29  ;;  %v1207_v63 = vand.u32 4294901760, %v2665_v56  ;;  %p2092_p13 = scmp.lt.s32.totalorder %s2878_s27, %s2090_s12  ;;  %p2093_p4 = scmp.lt.s32.totalorder %s2091_s14, %s2085_s29 }
  0x74   : > { %865 = vmatpush1.msra.mxu0 %v523_v8  ;;  %898 = vmatprep.mubr.f32.mxu0 %v2192_v0  ;;  %v1213_v1 = vand.u32 4294901760, %v2670_v58  ;;  %v1191_v8 = vand.u32 4294901760, %v1190_v61  ;;  %p2087_p0 = pnand %p2086_p8, %p2288_p9 }
  0x75   : > { %795 = vmatmul.mubr.f32.gmra.mxu1 %v2530_v21  ;;  %1053 = vmatprep.subr.mxu0 %v2570_v44  ;;  %v1208_v16 = vsub.f32 %v2665_v56, %v1207_v63  ;;  %p2094_p5 = por %p2093_p4, %p2092_p13 }
  0x76   : > { %962 = vmatpush1.msra.mxu1 %v2391_v13  ;;  %800 = vmatprep.mubr.f32.mxu1 %v2192_v0  ;;  %v1184_v13 = vsub.f32 %v2610_v25, %v1183_v11  ;;  %v1214_v20 = vsub.f32 %v2670_v58, %v1213_v1  ;;  %p2088_p2 = pneg %p2087_p0 }
  0x77   : > { %900 = vmatmul.mubr.f32.vlgmr.msra.gmra.mxu0 %v2411_v22  ;;  %964 = vmatprep.subr.mxu1 %v2399_v17  ;;  %v1195_v17 = vand.u32 4294901760, %v2648_v52  ;;  %v1209_v39 = vand.u32 4294901760, %v1208_v16 }
  0x78   : > { %905 = vmatprep.mubr.f32.mxu0 %v2192_v0  ;;  %966 = vmatpush1.msra.mxu1 %v2401_v18  ;;  %v1201_v18 = vand.u32 4294901760, %v2657_v55  ;;  %v1185_v62 = vand.u32 4294901760, %v1184_v13  ;;  %v1215_v43 = vand.u32 4294901760, %v1214_v20  ;;  %v1718_v20 = vld [vmem:[%s2367_s21] sm:$0xff]  ;;  %p2095_p6 = pnand %p2094_p5, %p2088_p2 }
  0x79   : > { %804 = vmatmul.mubr.f32.gmra.mxu1 %v2534_v28  ;;  %1055 = vmatpush1.msra.mxu0 %v2582_v48  ;;  %v1196_v2 = vsub.f32 %v2648_v52, %v1195_v17 }
  0x7a   : > { %999 = vmatprep.mubr.f32.mxu1 %v2192_v0  ;;  %1174 = vmatprep.subr.mxu1 %v1173_v12  ;;  %v1202_v10 = vsub.f32 %v2657_v55, %v1201_v18 }
  0x7b   : > { %907 = vmatmul.mubr.f32.gmra.mxu0 %v2446_v37  ;;  %1057 = vmatprep.subr.mxu0 %v2589_v50  ;;  %v1197_v34 = vand.u32 4294901760, %v1196_v2 }
  0x7c   : > { %912 = vmatprep.mubr.f32.mxu0 %v2192_v0  ;;  %1059 = vmatpush1.msra.mxu0 %v2603_v23  ;;  %v1203_v35 = vand.u32 4294901760, %v1202_v10 }
  0x7d   : > { %1001 = vmatmul.mubr.f32.vlgmr.msra.gmra.mxu1 %v2411_v22  ;;  %1061 = vmatprep.subr.mxu0 %v2620_v32 }
  0x7e   : > { %1180 = vmatpush1.msra.mxu1 %v1179_v59  ;;  %1006 = vmatprep.mubr.f32.mxu1 %v2192_v0 }
  0x7f   : > { %914 = vmatmul.mubr.f32.gmra.mxu0 %v2507_v3  ;;  %1186 = vmatprep.subr.mxu1 %v1185_v62 }
  0x80   : > { %919 = vmatprep.mubr.f32.mxu0 %v2192_v0  ;;  %1063 = vmatpush1.msra.mxu0 %v2629_v27 }
  0x81   : > { %1008 = vmatmul.mubr.f32.gmra.mxu1 %v2446_v37  ;;  %1065 = vmatprep.subr.mxu0 %v2638_v36 }
  0x82   : > { %1192 = vmatpush1.msra.mxu1 %v1191_v8  ;;  %1013 = vmatprep.mubr.f32.mxu1 %v2192_v0 }
  0x83   : > { %921 = vmatmul.mubr.f32.gmra.mxu0 %v2509_v4  ;;  %1198 = vmatprep.subr.mxu1 %v1197_v34 }
  0x84   : > { %1067 = vmatpush1.msra.mxu0 %v2643_v38  ;;  %1100 = vmatprep.mubr.f32.mxu0 %v2192_v0 }
  0x85   : > { %1015 = vmatmul.mubr.f32.gmra.mxu1 %v2507_v3  ;;  %1304 = vmatprep.subr.mxu0 %v2587_v49 }
  0x86   : > { %1204 = vmatpush1.msra.mxu1 %v1203_v35  ;;  %1020 = vmatprep.mubr.f32.mxu1 %v2192_v0 }
  0x87   : > { %1106 = vmatmul.mubr.f32.vlgmr.msra.gmra.mxu0 %v2497_v60  ;;  %1210 = vmatprep.subr.mxu1 %v1209_v39 }
  0x88   : > { %1111 = vmatprep.mubr.f32.mxu0 %v2192_v0  ;;  %1216 = vmatpush1.msra.mxu1 %v1215_v43 }
  0x89   : > { %1022 = vmatmul.mubr.f32.gmra.mxu1 %v2509_v4  ;;  %1307 = vmatpush1.msra.mxu0 %v2601_v5 }
  0x8a   : > { %1249 = vmatprep.mubr.f32.mxu1 %v2192_v0  ;;  %1416 = vmatprep.subr.mxu1 %v2570_v44 }
  0x8b   : > { %1117 = vmatmul.mubr.f32.gmra.mxu0 %v2514_v9  ;;  %1310 = vmatprep.subr.mxu0 %v2610_v25 }
  0x8c   : > { %1122 = vmatprep.mubr.f32.mxu0 %v2192_v0  ;;  %1313 = vmatpush1.msra.mxu0 %v2627_v51 }
  0x8d   : > { %1251 = vmatmul.mubr.f32.vlgmr.msra.gmra.mxu1 %v2411_v22  ;;  %1316 = vmatprep.subr.mxu0 %v2648_v52 }
  0x8e   : > { %1418 = vmatpush1.msra.mxu1 %v2582_v48  ;;  %1256 = vmatprep.mubr.f32.mxu1 %v2192_v0 }
  0x8f   : > { %1128 = vmatmul.mubr.f32.gmra.mxu0 %v2545_v41  ;;  %1420 = vmatprep.subr.mxu1 %v2589_v50 }
  0x90   : > { %1133 = vmatprep.mubr.f32.mxu0 %v2192_v0  ;;  %1319 = vmatpush1.msra.mxu0 %v2657_v55 }
  0x91   : > { %1258 = vmatmul.mubr.f32.gmra.mxu1 %v2446_v37  ;;  %1322 = vmatprep.subr.mxu0 %v2665_v56 }
  0x92   : > { %1422 = vmatpush1.msra.mxu1 %v2603_v23  ;;  %1263 = vmatprep.mubr.f32.mxu1 %v2192_v0 }
  0x93   : > { %1139 = vmatmul.mubr.f32.gmra.mxu0 %v2551_v42  ;;  %1424 = vmatprep.subr.mxu1 %v2620_v32 }
  0x94   : > { %1325 = vmatpush1.msra.mxu0 %v2670_v58  ;;  %1358 = vmatprep.mubr.f32.mxu0 %v2192_v0 }
  0x95   : > { %1265 = vmatmul.mubr.f32.gmra.mxu1 %v2507_v3  ;;  %1527 = vmatprep.subr.mxu0 %v1171_v24 }
  0x96   : > { %1426 = vmatpush1.msra.mxu1 %v2629_v27  ;;  %1270 = vmatprep.mubr.f32.mxu1 %v2192_v0 }
  0x97   : > { %1361 = vmatmul.mubr.f32.vlgmr.msra.gmra.mxu0 %v2433_v30  ;;  %1428 = vmatprep.subr.mxu1 %v2638_v36 }
  0x98   : > { %1366 = vmatprep.mubr.f32.mxu0 %v2192_v0  ;;  %1430 = vmatpush1.msra.mxu1 %v2643_v38 }
  0x99   : > { %1272 = vmatmul.mubr.f32.gmra.mxu1 %v2509_v4  ;;  %1531 = vmatpush1.msra.mxu0 %v1177_v33 }
  0x9a   : > { %1463 = vmatprep.mubr.f32.mxu1 %v2192_v0  ;;  %1642 = vmatprep.subr.mxu1 %v2570_v44 }
  0x9b   : > { %1369 = vmatmul.mubr.f32.gmra.mxu0 %v2470_v46  ;;  %1535 = vmatprep.subr.mxu0 %v1183_v11 }
  0x9c   : > { %1374 = vmatprep.mubr.f32.mxu0 %v2192_v0  ;;  %1539 = vmatpush1.msra.mxu0 %v1189_v54 }
  0x9d   : > { %1467 = vmatmul.mubr.f32.vlgmr.msra.gmra.mxu1 %v2454_v40  ;;  %1543 = vmatprep.subr.mxu0 %v1195_v17 }
  0x9e   : > { %1644 = vmatpush1.msra.mxu1 %v2582_v48  ;;  %1472 = vmatprep.mubr.f32.mxu1 %v2192_v0 }
  0x9f   : > { %1377 = vmatmul.mubr.f32.gmra.mxu0 %v2520_v14  ;;  %1646 = vmatprep.subr.mxu1 %v2589_v50 }
  0xa0   : > { %1382 = vmatprep.mubr.f32.mxu0 %v2192_v0  ;;  %1547 = vmatpush1.msra.mxu0 %v1201_v18 }
  0xa1   : > { %1476 = vmatmul.mubr.f32.gmra.mxu1 %v2491_v57  ;;  %1551 = vmatprep.subr.mxu0 %v1207_v63 }
  0xa2   : > { %1648 = vmatpush1.msra.mxu1 %v2603_v23  ;;  %1481 = vmatprep.mubr.f32.mxu1 %v2192_v0 }
  0xa3   : > { %1385 = vmatmul.mubr.f32.gmra.mxu0 %v2523_v15  ;;  %1650 = vmatprep.subr.mxu1 %v2620_v32 }
  0xa4   : > { %1555 = vmatpush1.msra.mxu0 %v1213_v1  ;;  %1588 = vmatprep.mubr.f32.mxu0 %v2192_v0 }
  0xa5   : > { %1485 = vmatmul.mubr.f32.gmra.mxu1 %v2530_v21 }
  0xa6   : > { %1652 = vmatpush1.msra.mxu1 %v2629_v27  ;;  %1490 = vmatprep.mubr.f32.mxu1 %v2192_v0 }
  0xa7   : > { %1590 = vmatmul.mubr.f32.vlgmr.msra.gmra.mxu0 %v2411_v22  ;;  %1654 = vmatprep.subr.mxu1 %v2638_v36 }
  0xa8   : > { %1595 = vmatprep.mubr.f32.mxu0 %v2192_v0  ;;  %1656 = vmatpush1.msra.mxu1 %v2643_v38 }
  0xa9   : > { %1494 = vmatmul.mubr.f32.gmra.mxu1 %v2534_v28 }
  0xaa   : > { %1689 = vmatprep.mubr.f32.mxu1 %v2192_v0 }
  0xab   : > { %1597 = vmatmul.mubr.f32.gmra.mxu0 %v2446_v37 }
  0xac   : > { %1602 = vmatprep.mubr.f32.mxu0 %v2192_v0 }
  0xad   : > { %1691 = vmatmul.mubr.f32.vlgmr.msra.gmra.mxu1 %v2411_v22 }
  0xae   : > { %1696 = vmatprep.mubr.f32.mxu1 %v2192_v0 }
  0xaf   : > { %1604 = vmatmul.mubr.f32.gmra.mxu0 %v2507_v3 }
  0xb0   : > { %1609 = vmatprep.mubr.f32.mxu0 %v2192_v0 }
  0xb1   : > { %1698 = vmatmul.mubr.f32.gmra.mxu1 %v2446_v37 }
  0xb2   : > { %1703 = vmatprep.mubr.f32.mxu1 %v2192_v0 }
  0xb3   : > { %1611 = vmatmul.mubr.f32.gmra.mxu0 %v2509_v4 }
  0xb5   : > { %1705 = vmatmul.mubr.f32.gmra.mxu1 %v2507_v3 }
  0xb6   : > { %1710 = vmatprep.mubr.f32.mxu1 %v2192_v0 }
  0xb9   : > { %1712 = vmatmul.mubr.f32.gmra.mxu1 %v2509_v4 }
  0xc5   : > { %v2810_v6 = vpop.permute.xlu1 %317 }
  0xc8   : > { %v2805_v47 = vpop.permute.xlu0 %307 }
  0xc9   : > { %v2818_v13 = vpop.permute.xlu1 %322 }
  0xcc   : > { %v2808_v24 = vpop.permute.xlu0 %312 }
 0x117   : > { %v417_v30 = vpop.f32.mrf.mxu0 }
 0x118   : > { %v418_v26 = vadd.f32 %v417_v30, %v2805_v47 }
 0x119   : > { %v419_v22 = vpop.f32.mrf.mxu0 }
 0x11a   : > { %v420_v51 = vadd.f32 %v419_v22, %v2805_v47 }
 0x11b   : > { %v428_v40 = vpop.f32.mrf.mxu0 }
 0x11c   : > { %v562_v57 = vpop.f32.mrf.mxu1  ;;  %v429_v27 = vadd.f32 %v428_v40, %v2808_v24 }
 0x11d   : > { %v430_v46 = vpop.f32.mrf.mxu0  ;;  %v563_v33 = vadd.f32 %v562_v57, %v418_v26  ;;  %v1719_v57 = vld [vmem:[%s2367_s21 + $0x8] sm:$0xff] }
 0x11e   : > { %v564_v9 = vpop.f32.mrf.mxu1  ;;  %v431_v12 = vadd.f32 %v430_v46, %v2808_v24 }
 0x11f   : > { %v439_v60 = vpop.f32.mrf.mxu0  ;;  %v565_v36 = vadd.f32 %v564_v9, %v420_v51  ;;  %v1723_v51 = vld [vmem:[%s2367_s21 + $0x28] sm:$0xff] }
 0x120   : > { %v569_v15 = vpop.f32.mrf.mxu1  ;;  %v440_v52 = vadd.f32 %v439_v60, %v2810_v6 }
 0x121   : > { %v441_v14 = vpop.f32.mrf.mxu0  ;;  %v570_v55 = vadd.f32 %v569_v15, %v429_v27 }
 0x122   : > { %v571_v21 = vpop.f32.mrf.mxu1  ;;  %v442_v2 = vadd.f32 %v441_v14, %v2810_v6 }
 0x123   : > { %v450_v37 = vpop.f32.mrf.mxu0  ;;  %v572_v61 = vadd.f32 %v571_v21, %v431_v12 }
 0x124   : > { %v451_v8 = vadd.f32 %v450_v37, %v2818_v13 }
 0x125   : > { %v2801_v28 = vpop.f32.mrf.mxu0  ;;  %v576_v41 = vpop.f32.mrf.mxu1 }
 0x126   : > { %v577_v1 = vadd.f32 %v576_v41, %v440_v52  ;;  %v453_v37 = vadd.f32 %v2801_v28, %v2818_v13 }
 0x127   : > { %v672_v42 = vpop.f32.mrf.mxu0  ;;  %v578_v3 = vpop.f32.mrf.mxu1 }
 0x128   : > { %v673_v38 = vadd.f32 %v672_v42, %v563_v33  ;;  %v579_v30 = vadd.f32 %v578_v3, %v442_v2 }
 0x129   : > { %v674_v44 = vpop.f32.mrf.mxu0  ;;  %v583_v0 = vpop.f32.mrf.mxu1 }
 0x12a   : > { %v675_v56 = vadd.f32 %v674_v44, %v565_v36  ;;  %v584_v14 = vadd.f32 %v583_v0, %v451_v8 }
 0x12b   : > { %v680_v45 = vpop.f32.mrf.mxu0  ;;  %v2803_v4 = vpop.f32.mrf.mxu1 }
 0x12c   : > { %v681_v18 = vadd.f32 %v680_v45, %v570_v55 }
 0x12d   : > { %v682_v48 = vpop.f32.mrf.mxu0  ;;  %v778_v49 = vpop.f32.mrf.mxu1 }
 0x12e   : > { %v779_v58 = vadd.f32 %v778_v49, %v673_v38  ;;  %v683_v34 = vadd.f32 %v682_v48, %v572_v61  ;;  %v1722_v48 = vld [vmem:[%s2367_s21 + $0x20] sm:$0xff] }
 0x12f   : > { %v688_v50 = vpop.f32.mrf.mxu0  ;;  %v780_v19 = vpop.f32.mrf.mxu1 }
 0x130   : > { %v781_v62 = vadd.f32 %v780_v19, %v675_v56  ;;  %v689_v22 = vadd.f32 %v688_v50, %v577_v1  ;;  %v1730_v1 = vld [vmem:[%s2367_s21 + $0x60] sm:$0xff] }
 0x131   : > { %v690_v5 = vpop.f32.mrf.mxu0  ;;  %v787_v23 = vpop.f32.mrf.mxu1 }
 0x132   : > { %v788_v35 = vadd.f32 %v787_v23, %v681_v18  ;;  %v691_v41 = vadd.f32 %v690_v5, %v579_v30  ;;  %v586_v23 = vadd.f32 %v2803_v4, %v453_v37 }
 0x133   : > { %v696_v25 = vpop.f32.mrf.mxu0  ;;  %v789_v31 = vpop.f32.mrf.mxu1 }
 0x134   : > { %v790_v60 = vadd.f32 %v789_v31, %v683_v34  ;;  %v697_v26 = vadd.f32 %v696_v25, %v584_v14  ;;  %v1731_v34 = vld [vmem:[%s2367_s21 + $0x68] sm:$0xff] }
 0x135   : > { %v2812_v32 = vpop.f32.mrf.mxu0  ;;  %v796_v7 = vpop.f32.mrf.mxu1 }
 0x136   : > { %v797_v42 = vadd.f32 %v796_v7, %v689_v22 }
 0x137   : > { %v901_v29 = vpop.f32.mrf.mxu0  ;;  %v798_v11 = vpop.f32.mrf.mxu1 }
 0x138   : > { %v902_v63 = vadd.f32 %v901_v29, %v779_v58  ;;  %v799_v31 = vadd.f32 %v798_v11, %v691_v41  ;;  %v699_v29 = vadd.f32 %v2812_v32, %v586_v23  ;;  %v1726_v11 = vld [vmem:[%s2367_s21 + $0x40] sm:$0xff] }
 0x139   : > { %v903_v53 = vpop.f32.mrf.mxu0  ;;  %v805_v54 = vpop.f32.mrf.mxu1 }
 0x13a   : > { %v904_v39 = vadd.f32 %v903_v53, %v781_v62  ;;  %v806_v4 = vadd.f32 %v805_v54, %v697_v26 }
 0x13b   : > { %v908_v17 = vpop.f32.mrf.mxu0  ;;  %v807_v59 = vpop.f32.mrf.mxu1 }
 0x13c   : > { %v909_v9 = vadd.f32 %v908_v17, %v788_v35  ;;  %v808_v12 = vadd.f32 %v807_v59, %v699_v29  ;;  %v1727_v17 = vld [vmem:[%s2367_s21 + $0x48] sm:$0xff] }
 0x13d   : > { %v910_v10 = vpop.f32.mrf.mxu0  ;;  %v1002_v16 = vpop.f32.mrf.mxu1 }
 0x13e   : > { %v1003_v43 = vadd.f32 %v1002_v16, %v902_v63  ;;  %v911_v3 = vadd.f32 %v910_v10, %v790_v60 }
 0x13f   : > { %v915_v40 = vpop.f32.mrf.mxu0  ;;  %v1004_v46 = vpop.f32.mrf.mxu1 }
 0x140   : > { %v1734_v15 = vadd.f32 %v1718_v20, %v1003_v43  ;;  %v1005_v21 = vadd.f32 %v1004_v46, %v904_v39  ;;  %v916_v28 = vadd.f32 %v915_v40, %v797_v42 }
 0x141   : > { %v917_v44 = vpop.f32.mrf.mxu0  ;;  %v1009_v45 = vpop.f32.mrf.mxu1 }
 0x142   : > { %v1750_v49 = vmul.f32 0.70710677, %v1734_v15  ;;  %v1735_v50 = vadd.f32 %v1719_v57, %v1005_v21  ;;  %v1010_v19 = vadd.f32 %v1009_v45, %v909_v9  ;;  %v918_v38 = vadd.f32 %v917_v44, %v799_v31 }
 0x143   : > { %v922_v0 = vpop.f32.mrf.mxu0  ;;  %v1011_v33 = vpop.f32.mrf.mxu1 }
 0x144   : > { %1766 = vst [vmem:[%s2830_s10] sm:$0xff] %v1750_v49  ;;  %v1751_v5 = vmul.f32 0.70710677, %v1735_v50  ;;  %v1738_v7 = vadd.f32 %v1722_v48, %v1010_v19  ;;  %v1012_v27 = vadd.f32 %v1011_v33, %v911_v3  ;;  %v923_v61 = vadd.f32 %v922_v0, %v806_v4 }
 0x145   : > { %v924_v36 = vpop.f32.mrf.mxu0  ;;  %v1016_v25 = vpop.f32.mrf.mxu1 }
 0x146   : > { %1767 = vst [vmem:[%s2830_s10 + $0x8] sm:$0xff] %v1751_v5  ;;  %v1754_v52 = vmul.f32 0.70710677, %v1738_v7  ;;  %v1739_v53 = vadd.f32 %v1723_v51, %v1012_v27  ;;  %v1017_v55 = vadd.f32 %v1016_v25, %v916_v28  ;;  %v925_v2 = vadd.f32 %v924_v36, %v808_v12 }
 0x147   : > { %v1107_v56 = vpop.f32.mrf.mxu0  ;;  %v1018_v58 = vpop.f32.mrf.mxu1 }
 0x148   : > { %1770 = vst [vmem:[%s2830_s10 + $0x20] sm:$0xff] %v1754_v52  ;;  %v1755_v32 = vmul.f32 0.70710677, %v1739_v53  ;;  %v1742_v54 = vadd.f32 %v1726_v11, %v1017_v55  ;;  %v1019_v18 = vadd.f32 %v1018_v58, %v918_v38  ;;  %v1108_v51 = vadd.f32 %v1107_v56, %v2805_v47 }
 0x149   : > { %v1109_v62 = vpop.f32.mrf.mxu0  ;;  %v1023_v63 = vpop.f32.mrf.mxu1 }
 0x14a   : > { %1771 = vst [vmem:[%s2830_s10 + $0x28] sm:$0xff] %v1755_v32  ;;  %v1758_v8 = vmul.f32 0.70710677, %v1742_v54  ;;  %v1743_v10 = vadd.f32 %v1727_v17, %v1019_v18  ;;  %v1024_v59 = vadd.f32 %v1023_v63, %v923_v61  ;;  %v1110_v29 = vadd.f32 %v1109_v62, %v2805_v47 }
 0x14b   : > { %v1118_v16 = vpop.f32.mrf.mxu0  ;;  %v1025_v20 = vpop.f32.mrf.mxu1 }
 0x14c   : > { %1774 = vst [vmem:[%s2830_s10 + $0x40] sm:$0xff] %v1758_v8  ;;  %v1759_v35 = vmul.f32 0.70710677, %v1743_v10  ;;  %v1746_v39 = vadd.f32 %v1730_v1, %v1024_v59  ;;  %v1026_v43 = vadd.f32 %v1025_v20, %v925_v2  ;;  %v1119_v4 = vadd.f32 %v1118_v16, %v2808_v24  ;;  %v1720_v16 = vld [vmem:[%s2367_s21 + $0x10] sm:$0xff] }
 0x14d   : > { %v1120_v30 = vpop.f32.mrf.mxu0  ;;  %v1252_v22 = vpop.f32.mrf.mxu1 }
 0x14e   : > { %1775 = vst [vmem:[%s2830_s10 + $0x48] sm:$0xff] %v1759_v35  ;;  %v1762_v40 = vmul.f32 0.70710677, %v1746_v39  ;;  %v1747_v46 = vadd.f32 %v1731_v34, %v1026_v43  ;;  %v1253_v36 = vadd.f32 %v1252_v22, %v1108_v51  ;;  %v1121_v56 = vadd.f32 %v1120_v30, %v2808_v24 }
 0x14f   : > { %v1129_v57 = vpop.f32.mrf.mxu0  ;;  %v1254_v60 = vpop.f32.mrf.mxu1 }
 0x150   : > { %1778 = vst [vmem:[%s2830_s10 + $0x60] sm:$0xff] %v1762_v40  ;;  %v1763_v9 = vmul.f32 0.70710677, %v1747_v46  ;;  %v1255_v38 = vadd.f32 %v1254_v60, %v1110_v29  ;;  %v1130_v53 = vadd.f32 %v1129_v57, %v2810_v6  ;;  %v1721_v40 = vld [vmem:[%s2367_s21 + $0x18] sm:$0xff] }
 0x151   : > { %v1131_v15 = vpop.f32.mrf.mxu0  ;;  %v1259_v21 = vpop.f32.mrf.mxu1 }
 0x152   : > { %1779 = vst [vmem:[%s2830_s10 + $0x68] sm:$0xff] %v1763_v9  ;;  %v1260_v58 = vadd.f32 %v1259_v21, %v1119_v4  ;;  %v1132_v1 = vadd.f32 %v1131_v15, %v2810_v6 }
 0x153   : > { %v1140_v14 = vpop.f32.mrf.mxu0  ;;  %v1261_v37 = vpop.f32.mrf.mxu1 }
 0x154   : > { %v1262_v47 = vadd.f32 %v1261_v37, %v1121_v56  ;;  %v1141_v2 = vadd.f32 %v1140_v14, %v2818_v13 }
 0x155   : > { %v1142_v41 = vpop.f32.mrf.mxu0  ;;  %v1266_v42 = vpop.f32.mrf.mxu1 }
 0x156   : > { %v1267_v8 = vadd.f32 %v1266_v42, %v1130_v53  ;;  %v1143_v9 = vadd.f32 %v1142_v41, %v2818_v13 }
 0x157   : > { %v1362_v44 = vpop.f32.mrf.mxu0  ;;  %v1268_v45 = vpop.f32.mrf.mxu1 }
 0x158   : > { %v1363_v52 = vadd.f32 %v1362_v44, %v1253_v36  ;;  %v1269_v39 = vadd.f32 %v1268_v45, %v1132_v1  ;;  %v1724_v44 = vld [vmem:[%s2367_s21 + $0x30] sm:$0xff] }
 0x159   : > { %v1364_v48 = vpop.f32.mrf.mxu0  ;;  %v1273_v3 = vpop.f32.mrf.mxu1  ;;  %v1728_v36 = vld [vmem:[%s2367_s21 + $0x50] sm:$0xff] }
 0x15a   : > { %v1365_v17 = vadd.f32 %v1364_v48, %v1255_v38  ;;  %v1274_v15 = vadd.f32 %v1273_v3, %v1141_v2  ;;  %v1725_v3 = vld [vmem:[%s2367_s21 + $0x38] sm:$0xff] }
 0x15b   : > { %v1370_v49 = vpop.f32.mrf.mxu0  ;;  %v1275_v50 = vpop.f32.mrf.mxu1 }
 0x15c   : > { %v1371_v18 = vadd.f32 %v1370_v49, %v1260_v58 }
 0x15d   : > { %v1372_v19 = vpop.f32.mrf.mxu0  ;;  %v1468_v23 = vpop.f32.mrf.mxu1 }
 0x15e   : > { %v1469_v61 = vadd.f32 %v1468_v23, %v1363_v52  ;;  %v1373_v20 = vadd.f32 %v1372_v19, %v1262_v47  ;;  %v1276_v23 = vadd.f32 %v1275_v50, %v1143_v9 }
 0x15f   : > { %v1378_v26 = vpop.f32.mrf.mxu0  ;;  %v1470_v31 = vpop.f32.mrf.mxu1 }
 0x160   : > { %v1471_v62 = vadd.f32 %v1470_v31, %v1365_v17  ;;  %v1379_v43 = vadd.f32 %v1378_v26, %v1267_v8 }
 0x161   : > { %v1380_v0 = vpop.f32.mrf.mxu0  ;;  %v1477_v33 = vpop.f32.mrf.mxu1 }
 0x162   : > { %v1478_v24 = vadd.f32 %v1477_v33, %v1371_v18  ;;  %v1381_v21 = vadd.f32 %v1380_v0, %v1269_v39 }
 0x163   : > { %v1386_v28 = vpop.f32.mrf.mxu0  ;;  %v1479_v5 = vpop.f32.mrf.mxu1 }
 0x164   : > { %v1480_v46 = vadd.f32 %v1479_v5, %v1373_v20  ;;  %v1387_v26 = vadd.f32 %v1386_v28, %v1274_v15 }
 0x165   : > { %v2846_v7 = vpop.f32.mrf.mxu0  ;;  %v1486_v27 = vpop.f32.mrf.mxu1 }
 0x166   : > { %v1487_v14 = vadd.f32 %v1486_v27, %v1379_v43  ;;  %v1389_v27 = vadd.f32 %v2846_v7, %v1276_v23 }
 0x167   : > { %v1591_v25 = vpop.f32.mrf.mxu0  ;;  %v1488_v11 = vpop.f32.mrf.mxu1 }
 0x168   : > { %v1592_v63 = vadd.f32 %v1591_v25, %v1469_v61  ;;  %v1489_v31 = vadd.f32 %v1488_v11, %v1381_v21  ;;  %v1732_v61 = vld [vmem:[%s2367_s21 + $0x70] sm:$0xff] }
 0x169   : > { %v1593_v55 = vpop.f32.mrf.mxu0  ;;  %v1495_v12 = vpop.f32.mrf.mxu1 }
 0x16a   : > { %v1594_v34 = vadd.f32 %v1593_v55, %v1471_v62  ;;  %v1496_v29 = vadd.f32 %v1495_v12, %v1387_v26  ;;  %v1729_v55 = vld [vmem:[%s2367_s21 + $0x58] sm:$0xff] }
 0x16b   : > { %v1598_v32 = vpop.f32.mrf.mxu0  ;;  %v1497_v54 = vpop.f32.mrf.mxu1 }
 0x16c   : > { %v1599_v57 = vadd.f32 %v1598_v32, %v1478_v24  ;;  %v1498_v38 = vadd.f32 %v1497_v54, %v1389_v27 }
 0x16d   : > { %v1600_v10 = vpop.f32.mrf.mxu0  ;;  %v1692_v59 = vpop.f32.mrf.mxu1 }
 0x16e   : > { %v1693_v35 = vadd.f32 %v1692_v59, %v1592_v63  ;;  %v1601_v48 = vadd.f32 %v1600_v10, %v1480_v46  ;;  %v1733_v63 = vld [vmem:[%s2367_s21 + $0x78] sm:$0xff]  ;;  %s1783_s21 = scalar_lea.sflag [#allocation4], %s2352_s2 }
 0x16f   : > { %v1605_v30 = vpop.f32.mrf.mxu0  ;;  %v1694_v22 = vpop.f32.mrf.mxu1 }
 0x170   : > { %v1736_v60 = vadd.f32 %v1720_v16, %v1693_v35  ;;  %v1695_v6 = vadd.f32 %v1694_v22, %v1594_v34  ;;  %v1606_v0 = vadd.f32 %v1605_v30, %v1487_v14 }
 0x171   : > { %v1607_v37 = vpop.f32.mrf.mxu0  ;;  %v1699_v42 = vpop.f32.mrf.mxu1 }
 0x172   : > { %v1752_v45 = vmul.f32 0.70710677, %v1736_v60  ;;  %v1737_v49 = vadd.f32 %v1721_v40, %v1695_v6  ;;  %v1700_v19 = vadd.f32 %v1699_v42, %v1599_v57  ;;  %v1608_v50 = vadd.f32 %v1607_v37, %v1489_v31 }
 0x173   : > { %v1612_v13 = vpop.f32.mrf.mxu0  ;;  %v1701_v41 = vpop.f32.mrf.mxu1 }
 0x174   : > { %1768 = vst [vmem:[%s2830_s10 + $0x10] sm:$0xff] %v1752_v45  ;;  %v1753_v33 = vmul.f32 0.70710677, %v1737_v49  ;;  %v1740_v51 = vadd.f32 %v1724_v44, %v1700_v19  ;;  %v1702_v5 = vadd.f32 %v1701_v41, %v1601_v48  ;;  %v1613_v7 = vadd.f32 %v1612_v13, %v1496_v29 }
 0x175   : > { %v1706_v4 = vpop.f32.mrf.mxu1  ;;  %v1614_v52 = vpop.f32.mrf.mxu0 }
 0x176   : > { %1769 = vst [vmem:[%s2830_s10 + $0x18] sm:$0xff] %v1753_v33  ;;  %v1756_v28 = vmul.f32 0.70710677, %v1740_v51  ;;  %v1741_v25 = vadd.f32 %v1725_v3, %v1702_v5  ;;  %v1707_v11 = vadd.f32 %v1706_v4, %v1606_v0  ;;  %v1615_v32 = vadd.f32 %v1614_v52, %v1498_v38 }
 0x177   : > { %v1708_v53 = vpop.f32.mrf.mxu1 }
 0x178   : > { %1772 = vst [vmem:[%s2830_s10 + $0x30] sm:$0xff] %v1756_v28  ;;  %v1757_v12 = vmul.f32 0.70710677, %v1741_v25  ;;  %v1744_v56 = vadd.f32 %v1728_v36, %v1707_v11  ;;  %v1709_v58 = vadd.f32 %v1708_v53, %v1608_v50 }
 0x179   : > { %v1713_v17 = vpop.f32.mrf.mxu1 }
 0x17a   : > { %1773 = vst [vmem:[%s2830_s10 + $0x38] sm:$0xff] %v1757_v12  ;;  %v1760_v47 = vmul.f32 0.70710677, %v1744_v56  ;;  %v1745_v54 = vadd.f32 %v1729_v55, %v1709_v58  ;;  %v1714_v18 = vadd.f32 %v1713_v17, %v1613_v7 }
 0x17b   : > { %v1715_v62 = vpop.f32.mrf.mxu1 }
 0x17c   : > { %1776 = vst [vmem:[%s2830_s10 + $0x50] sm:$0xff] %v1760_v47  ;;  %v1761_v1 = vmul.f32 0.70710677, %v1745_v54  ;;  %v1748_v2 = vadd.f32 %v1732_v61, %v1714_v18  ;;  %v1716_v8 = vadd.f32 %v1715_v62, %v1615_v32 }
 0x17e   : > { %1777 = vst [vmem:[%s2830_s10 + $0x58] sm:$0xff] %v1761_v1  ;;  %v1764_v10 = vmul.f32 0.70710677, %v1748_v2  ;;  %v1749_v59 = vadd.f32 %v1733_v63, %v1716_v8 }
 0x180   : > { %1780 = vst [vmem:[%s2830_s10 + $0x70] sm:$0xff] %v1764_v10  ;;  %v1765_v16 = vmul.f32 0.70710677, %v1749_v59 }
 0x182   : > { %1781 = vst [vmem:[%s2830_s10 + $0x78] sm:$0xff] %v1765_v16 }
 0x183   : > { %2098 = shalt.err (!%p2095_p6)
}
 0x184   : > { %s2099_s25 = scalar_lea.hbm %s2876_s7, 2048  ;;  %s2103_s28 = scalar_lea.hbm %s2937_s4, 8192 }
 0x185   : > { %p2100_p3 = scmp.ne.s32.totalorder %s2876_s7, %s2099_s25  ;;  %p2104_p10 = scmp.lt.s32.totalorder %s2876_s7, %s2937_s4 }
 0x186   : > { %p2105_p11 = scmp.lt.s32.totalorder %s2103_s28, %s2099_s25 }
 0x187   : > { %p2101_p7 = pnand %p2100_p3, %p2288_p9 }
 0x188   : > { %p2106_p8 = por %p2105_p11, %p2104_p10 }
 0x189   : > { %p2102_p1 = pneg %p2101_p7 }
 0x18b   : > { %p2107_p0 = pnand %p2106_p8, %p2102_p1 }
 0x18d   : > { %2110 = shalt.err (!%p2107_p0)
}
 0x18e   : > { %s2195_s10 = smov 512   ;;  %s2196_s9 = smov 1024  }
 0x18f   : > { %s2197_s6 = smov 32  }
 0x190   : > { %1940 = dma.vmem_to_hbm [thread:$0]  (%p2288_p9), %s2878_s27, 2048, %s2876_s7, %s1783_s21, %s2195_s10, %s2196_s9, %s2197_s6  }
 0x191 PF: > { %p1954_p2 = scmp.ge.s32.totalorder %s2185_s22, 2  ;;  %s1813_s18 = sand.u32 1, %s2157_s15  }
 0x192   : > { %s1814_s19 = scalar_lea.sflag [#allocation4], %s1813_s18 }
 0x193   : > { %p1950_p13 = pnand %p1954_p2, %p2294_p12 }
 0x195   : > { %p1951_p4 = pneg %p1950_p13 }
 0x197   : > { %2152 = dma.done.wait (%p1951_p4), %s1814_s19, 2048  }
 0x198   : > { %2154 = vsyncadd (%p1951_p4), %s1814_s19, 4294965248  ;;  %s23_s22 = sadd.s32 1, %s2185_s22   ;;  %s2957_s5 = sld [smem:[#allocation15_spill]] }
 0x199   : > { %p20_p5 = scmp.ge.s32.totalorder %s23_s22, 6   ;;  %s2958_s18 = sld [smem:[#allocation11_spill]] }
 0x19a   : > { %s2959_s19 = sld [smem:[#allocation12_spill]]  ;;  %s2962_s15 = smov %s2161_s16 }
 0x19b   : > { %s2960_s20 = sld [smem:[#allocation13_spill]]  ;;  %s2963_s16 = smov %s2165_s17 }
 0x19c   : > { %s2961_s21 = sld [smem:[#allocation14_spill]]  ;;  %22 = sbr.rel (!%p20_p5) target bundleno = 11 (0xb), region = 94 }
 0x19e   : > { %s2964_s17 = smov %s2957_s5 }
 0x1a1   :  { %1819 = vsyncpa [#allocation3], 1 }
 0x1a2   :  { %1821 = vsyncpa [#allocation3 + $0x1], 1 }
 0x1a3   :  { %1822 = vsyncpa [#allocation6], 1 }
 0x1a4   :  { %1824 = vsyncpa [#allocation6 + $0x1], 1 }
 0x1a5   :  { %1825 = vsyncpa [#allocation4], 1 }
 0x1a6   :  { %1827 = vsyncpa [#allocation4 + $0x1], 1 }

</bundles_post_ra>
